<compile_context>
chip_gen: v5e
topology: v5e:2x2
jax: 0.10.0
libtpu: 0.0.40
codegen_flags: <defaults>
</compile_context>

<pallas_src>
import jax
import jax.numpy as jnp
from jax import lax
from jax.experimental import pallas as pl
from jax.experimental.pallas import tpu as pltpu

INPUT_SIZE = 6
HIDDEN1, HIDDEN2 = 64, 32
OUTPUT_SIZE = 6

# Max rows (batch samples) per grid step.  Batch-major (TB, 6) staging tiles
# lane-pad 6 -> 128, i.e. ~2 MiB per buffer at TB=4096; with double-buffered
# input + output that is ~8 MiB of VMEM -> safe on v5e/v6e/v7x.
DEFAULT_TB_MAX = 4096


def _cdiv(a, b):
    return -(-a // b)


def mlp_kernel(x_ref, w1_ref, b1_ref, w2_ref, b2_ref, w3t_ref, b3_ref, o_ref):
    # x_ref / o_ref: (TB, 6) batch-major tiles.
    # Resident params: w1 (64, 6), b1 (64, 1), w2 (32, 64), b2 (32, 1),
    #                  w3t (32, 6) [= w3.T], b3 (1, 6).
    tb = x_ref.shape[0]
    chunk = 256 if tb % 256 == 0 else 128     # fused-chunk size (rows)
    n_chunks = tb // chunk

    w1 = w1_ref[...]
    b1 = b1_ref[...]
    w2 = w2_ref[...]
    b2 = b2_ref[...]
    w3t = w3t_ref[...]
    b3 = b3_ref[...]

    def body(c, carry):
        start = pl.multiple_of(c * chunk, chunk)
        x = x_ref[pl.ds(start, chunk), :]                           # (chunk, 6)

        # Layer 1: feature-major via NT dot (contract the size-6 dims of both
        # operands) -> (64, chunk); the batch lands on the 128-lane axis.
        h1 = lax.dot_general(w1, x, (((1,), (1,)), ((), ())),
                             preferred_element_type=jnp.float32)
        h1 = jnp.maximum(h1 + b1, 0.0)
        # Dropout(0.1): identity in eval mode.

        # Layer 2: standard feature-major dot -> (32, chunk).
        h2 = jnp.dot(w2, h1, preferred_element_type=jnp.float32)
        h2 = jnp.maximum(h2 + b2, 0.0)
        # Dropout(0.1): identity in eval mode.

        # Layer 3: TN dot (contract the size-32 dims) -> (chunk, 6), i.e. back
        # to batch-major so the store matches the (TB, 6) output block.
        out = lax.dot_general(h2, w3t, (((0,), (0,)), ((), ())),
                              preferred_element_type=jnp.float32)
        o_ref[pl.ds(start, chunk), :] = (out + b3).astype(o_ref.dtype)
        return carry

    lax.fori_loop(0, n_chunks, body, 0, unroll=True)


def gravity_trajectory_predictor(x, params, tb_max=DEFAULT_TB_MAX):
    """x: (B, 6) f32, batch-major.  Returns (B, 6) f32, batch-major."""
    (w1, b1), (w2, b2), (w3, b3) = params
    B = x.shape[0]

    # Pad the batch only to a multiple of 128; balance tiles so overshoot is
    # small, and force >= 2 grid steps when B >= 256 (both v7x TCs get work).
    nb = _cdiv(B, 128)                       # 128-row groups
    g_cap = max(tb_max // 128, 1)
    if nb >= 2:
        num_tiles = max(_cdiv(nb, g_cap), 2)
    else:
        num_tiles = 1
    g = _cdiv(nb, num_tiles)                 # 128-row groups per tile
    TB = g * 128
    B_pad = num_tiles * TB

    x_pad = x if B_pad == B else jnp.pad(x, ((0, B_pad - B), (0, 0)))

    # Tiny one-time parameter reshapes (negligible HBM traffic).
    b1c = b1.reshape(HIDDEN1, 1)
    b2c = b2.reshape(HIDDEN2, 1)
    w3t = jnp.transpose(w3)                  # (32, 6)
    b3r = b3.reshape(1, OUTPUT_SIZE)

    full = lambda a: pl.BlockSpec(a.shape, lambda i: (0, 0))

    out = pl.pallas_call(
        mlp_kernel,
        out_shape=jax.ShapeDtypeStruct((B_pad, OUTPUT_SIZE), jnp.float32),
        grid=(num_tiles,),
        in_specs=[
            pl.BlockSpec((TB, INPUT_SIZE), lambda i: (i, 0)),       # x tile
            full(w1), full(b1c),
            full(w2), full(b2c),
            full(w3t), full(b3r),
        ],
        out_specs=pl.BlockSpec((TB, OUTPUT_SIZE), lambda i: (i, 0)),
        compiler_params=pltpu.CompilerParams(
            dimension_semantics=("parallel",),
            vmem_limit_bytes=32 << 20,
        ),
    )(x_pad, w1, b1c, w2, b2c, w3t, b3r)

    return out if B_pad == B else out[:B]


def init_params(key):
    """PyTorch-Linear-style init: weight (out, in), bias (out,), U(+-1/sqrt(fan_in))."""
    sizes = [INPUT_SIZE, HIDDEN1, HIDDEN2, OUTPUT_SIZE]
    params = []
    for fan_in, fan_out in zip(sizes[:-1], sizes[1:]):
        key, kw, kb = jax.random.split(key, 3)
        bound = 1.0 / jnp.sqrt(float(fan_in))
        w = jax.random.uniform(kw, (fan_out, fan_in), jnp.float32, -bound, bound)
        b = jax.random.uniform(kb, (fan_out,), jnp.float32, -bound, bound)
        params.append((w, b))
    return params


def reference_forward(x, params):
    """Pure-JAX reference (eval mode: dropout = identity)."""
    (w1, b1), (w2, b2), (w3, b3) = params
    h = jnp.maximum(x @ w1.T + b1, 0.0)
    h = jnp.maximum(h @ w2.T + b2, 0.0)
    return h @ w3.T + b3


if __name__ == "__main__":
    key = jax.random.PRNGKey(0)
    key, kx1, kx2 = jax.random.split(key, 3)
    params = init_params(key)

    # 1) Small single-tile path (batch 8 padded to one 128-row tile).
    x1 = jax.random.normal(kx1, (8, INPUT_SIZE), dtype=jnp.float32)
    out1 = jax.block_until_ready(gravity_trajectory_predictor(x1, params))
    ref1 = reference_forward(x1, params)
    assert out1.shape == (8, OUTPUT_SIZE)
    assert jnp.allclose(out1, ref1, atol=1e-5, rtol=1e-5), "mismatch (batch=8)"

    # 2) Multi-tile, multi-chunk, ragged-batch path:
    #    B=1500 -> padded to 1536 rows, 2 tiles of 768 rows, 3 fused 256-row chunks per tile.
    x2 = jax.random.normal(kx2, (1500, INPUT_SIZE), dtype=jnp.float32)
    out2 = jax.block_until_ready(gravity_trajectory_predictor(x2, params))
    ref2 = reference_forward(x2, params)
    assert out2.shape == (1500, OUTPUT_SIZE)
    assert jnp.allclose(out2, ref2, atol=1e-5, rtol=1e-5), "mismatch (batch=1500)"

    print("KERNEL_OK")
</pallas_src>

<mosaic_0001>
module attributes {stable_mosaic.version = 11 : i64} {
  func.func @mlp_kernel(%arg0: i32, %arg1: memref<128x6xf32, #tpu.memory_space<vmem>>, %arg2: memref<64x6xf32, #tpu.memory_space<vmem>>, %arg3: memref<64x1xf32, #tpu.memory_space<vmem>>, %arg4: memref<32x64xf32, #tpu.memory_space<vmem>>, %arg5: memref<32x1xf32, #tpu.memory_space<vmem>>, %arg6: memref<32x6xf32, #tpu.memory_space<vmem>>, %arg7: memref<1x6xf32, #tpu.memory_space<vmem>>, %arg8: memref<128x6xf32, #tpu.memory_space<vmem>>) attributes {dimension_semantics = [#tpu.dimension_semantics<parallel>], iteration_bounds = array<i64: 1>, scalar_prefetch = 0 : i64, scratch_operands = 0 : i64, tpu.core_type = #tpu.core_type<tc>, window_params = [{transform_indices = @transform_0, window_bounds = array<i64: 128, 6>}, {pipeline_mode = #tpu.pipeline_mode<synchronous>, transform_indices = @transform_1, window_bounds = array<i64: 64, 6>}, {pipeline_mode = #tpu.pipeline_mode<synchronous>, transform_indices = @transform_2, window_bounds = array<i64: 64, 1>}, {pipeline_mode = #tpu.pipeline_mode<synchronous>, transform_indices = @transform_3, window_bounds = array<i64: 32, 64>}, {pipeline_mode = #tpu.pipeline_mode<synchronous>, transform_indices = @transform_4, window_bounds = array<i64: 32, 1>}, {pipeline_mode = #tpu.pipeline_mode<synchronous>, transform_indices = @transform_5, window_bounds = array<i64: 32, 6>}, {pipeline_mode = #tpu.pipeline_mode<synchronous>, transform_indices = @transform_6, window_bounds = array<i64: 1, 6>}, {transform_indices = @transform_7, window_bounds = array<i64: 128, 6>}]} {
    %c0 = arith.constant 0 : index
    %c0_0 = arith.constant 0 : index
    %0 = vector.load %arg2[%c0, %c0_0] : memref<64x6xf32, #tpu.memory_space<vmem>>, vector<64x6xf32>
    %c0_1 = arith.constant 0 : index
    %c0_2 = arith.constant 0 : index
    %1 = vector.load %arg3[%c0_1, %c0_2] : memref<64x1xf32, #tpu.memory_space<vmem>>, vector<64x1xf32>
    %c0_3 = arith.constant 0 : index
    %c0_4 = arith.constant 0 : index
    %2 = vector.load %arg4[%c0_3, %c0_4] : memref<32x64xf32, #tpu.memory_space<vmem>>, vector<32x64xf32>
    %c0_5 = arith.constant 0 : index
    %c0_6 = arith.constant 0 : index
    %3 = vector.load %arg5[%c0_5, %c0_6] : memref<32x1xf32, #tpu.memory_space<vmem>>, vector<32x1xf32>
    %c0_7 = arith.constant 0 : index
    %c0_8 = arith.constant 0 : index
    %4 = vector.load %arg6[%c0_7, %c0_8] : memref<32x6xf32, #tpu.memory_space<vmem>>, vector<32x6xf32>
    %c0_9 = arith.constant 0 : index
    %c0_10 = arith.constant 0 : index
    %5 = vector.load %arg7[%c0_9, %c0_10] : memref<1x6xf32, #tpu.memory_space<vmem>>, vector<1x6xf32>
    %c0_i32 = arith.constant 0 : i32
    %c128_i32 = arith.constant 128 : i32
    %6 = arith.muli %c0_i32, %c128_i32 : i32
    %7 = tpu.assume_multiple %6, 128 : i32
    %8 = arith.index_cast %7 : i32 to index
    %c0_11 = arith.constant 0 : index
    %9 = vector.load %arg1[%8, %c0_11] : memref<128x6xf32, #tpu.memory_space<vmem>>, vector<128x6xf32>
    %cst = arith.constant dense<0.000000e+00> : vector<64x128xf32>
    %10 = tpu.matmul %0, %9, %cst {dimension_numbers = #tpu.dot_dimension_numbers<[1], [1], [0], [0], [0, 0, 1, 0], [], []>} : vector<64x6xf32>, vector<128x6xf32>, vector<64x128xf32> -> vector<64x128xf32>
    %11 = vector.broadcast %1 : vector<64x1xf32> to vector<64x128xf32>
    %12 = arith.addf %10, %11 : vector<64x128xf32>
    %cst_12 = arith.constant 0.000000e+00 : f32
    %13 = vector.broadcast %cst_12 : f32 to vector<64x128xf32>
    %14 = arith.maximumf %12, %13 : vector<64x128xf32>
    %cst_13 = arith.constant dense<0.000000e+00> : vector<32x128xf32>
    %15 = tpu.matmul %2, %14, %cst_13 {dimension_numbers = #tpu.dot_dimension_numbers<[1], [0], [0], [1], [0, 0, 1, 1], [], []>} : vector<32x64xf32>, vector<64x128xf32>, vector<32x128xf32> -> vector<32x128xf32>
    %16 = vector.broadcast %3 : vector<32x1xf32> to vector<32x128xf32>
    %17 = arith.addf %15, %16 : vector<32x128xf32>
    %cst_14 = arith.constant 0.000000e+00 : f32
    %18 = vector.broadcast %cst_14 : f32 to vector<32x128xf32>
    %19 = arith.maximumf %17, %18 : vector<32x128xf32>
    %cst_15 = arith.constant dense<0.000000e+00> : vector<128x6xf32>
    %20 = tpu.matmul %19, %4, %cst_15 {dimension_numbers = #tpu.dot_dimension_numbers<[0], [0], [1], [1], [0, 1, 1, 1], [], []>} : vector<32x128xf32>, vector<32x6xf32>, vector<128x6xf32> -> vector<128x6xf32>
    %21 = vector.broadcast %5 : vector<1x6xf32> to vector<128x6xf32>
    %22 = arith.addf %20, %21 : vector<128x6xf32>
    %23 = arith.index_cast %7 : i32 to index
    %c0_16 = arith.constant 0 : index
    %24 = vector.load %arg8[%23, %c0_16] : memref<128x6xf32, #tpu.memory_space<vmem>>, vector<128x6xf32>
    tpu.vector_store %arg8[%23, %c0_16], %22 {strides = array<i32>} : memref<128x6xf32, #tpu.memory_space<vmem>>, vector<128x6xf32>,
    %c1_i32 = arith.constant 1 : i32
    return
  }
  func.func @transform_0(%arg0: i32) -> (i32, i32) {
    %c0_i32 = arith.constant 0 : i32
    %c0_i32_0 = arith.constant 0 : i32
    return %arg0, %c0_i32 : i32, i32
  }
  func.func @transform_1(%arg0: i32) -> (i32, i32) {
    %c0_i32 = arith.constant 0 : i32
    %c0_i32_0 = arith.constant 0 : i32
    %c0_i32_1 = arith.constant 0 : i32
    return %c0_i32, %c0_i32_0 : i32, i32
  }
  func.func @transform_2(%arg0: i32) -> (i32, i32) {
    %c0_i32 = arith.constant 0 : i32
    %c0_i32_0 = arith.constant 0 : i32
    %c0_i32_1 = arith.constant 0 : i32
    return %c0_i32, %c0_i32_0 : i32, i32
  }
  func.func @transform_3(%arg0: i32) -> (i32, i32) {
    %c0_i32 = arith.constant 0 : i32
    %c0_i32_0 = arith.constant 0 : i32
    %c0_i32_1 = arith.constant 0 : i32
    return %c0_i32, %c0_i32_0 : i32, i32
  }
  func.func @transform_4(%arg0: i32) -> (i32, i32) {
    %c0_i32 = arith.constant 0 : i32
    %c0_i32_0 = arith.constant 0 : i32
    %c0_i32_1 = arith.constant 0 : i32
    return %c0_i32, %c0_i32_0 : i32, i32
  }
  func.func @transform_5(%arg0: i32) -> (i32, i32) {
    %c0_i32 = arith.constant 0 : i32
    %c0_i32_0 = arith.constant 0 : i32
    %c0_i32_1 = arith.constant 0 : i32
    return %c0_i32, %c0_i32_0 : i32, i32
  }
  func.func @transform_6(%arg0: i32) -> (i32, i32) {
    %c0_i32 = arith.constant 0 : i32
    %c0_i32_0 = arith.constant 0 : i32
    %c0_i32_1 = arith.constant 0 : i32
    return %c0_i32, %c0_i32_0 : i32, i32
  }
  func.func @transform_7(%arg0: i32) -> (i32, i32) {
    %c0_i32 = arith.constant 0 : i32
    %c0_i32_0 = arith.constant 0 : i32
    return %arg0, %c0_i32 : i32, i32
  }
}

</mosaic_0001>

<bundles_post_ra>
// kernel: tpu_custom_call.1
= control target key start
LH: loop header
LB: loop body
LE: loop exit
PB: predicated region body
PF: predicated region fallthrough
CT: control target
= control target key end

     0   :  { %vm111_vm0 = vcmask 48128   ;;  %v522_v9 = vmov 0   ;;  %vm253_vm1 = vcmask 523264   ;;  %vm334_vm2 = vcmask 261120   ;;  %s802_s0 = inlined_call_operand.vmem [shape: f32[128,6], index: 0, kind: input, shape index: {}]   ;;  %s803_s2 = inlined_call_operand.vmem [shape: f32[64,1], index: 2, kind: input, shape index: {}]   ;;  %s804_s1 = inlined_call_operand.vmem [shape: f32[64,6], index: 1, kind: input, shape index: {}]   ;;  %s805_s4 = inlined_call_operand.vmem [shape: f32[32,1], index: 4, kind: input, shape index: {}]   ;;  %s806_s3 = inlined_call_operand.vmem [shape: f32[32,64], index: 3, kind: input, shape index: {}]   ;;  %s807_s5 = inlined_call_operand.vmem [shape: f32[32,6], index: 5, kind: input, shape index: {}]   ;;  %s808_s6 = inlined_call_operand.vmem [shape: f32[1,6], index: 6, kind: input, shape index: {}]   ;;  %s809_s7 = inlined_call_operand.vmem [shape: f32[128,6], index: 7, kind: output, shape index: {}]  }
   0x1   :  { %v70_v0 = vld [vmem:[%s802_s0 + $0x78] sm:$0xff]  ;;  %v69_v1 = vld [vmem:[%s802_s0 + $0x70] sm:$0xff]  ;;  %v68_v2 = vld [vmem:[%s802_s0 + $0x68] sm:$0xff]  ;;  %519 = vset.pattern.permute.xlu1 %v522_v9  ;;  %518 = vset.pattern.permute.xlu0 %v522_v9 }
   0x2   :  { %468 = vmatpush.xpose.msk.msra.mxu0 %vm111_vm0, %v70_v0  ;;  %v67_v3 = vld [vmem:[%s802_s0 + $0x60] sm:$0xff]  ;;  %v66_v4 = vld [vmem:[%s802_s0 + $0x58] sm:$0xff]  ;;  %v65_v5 = vld [vmem:[%s802_s0 + $0x50] sm:$0xff]  ;;  %520 = vset.pattern.permute.xlu2 %v522_v9 }
   0x3   :  { %v64_v6 = vld [vmem:[%s802_s0 + $0x48] sm:$0xff]  ;;  %v63_v8 = vld [vmem:[%s802_s0 + $0x40] sm:$0xff]  ;;  %v62_v10 = vld [vmem:[%s802_s0 + $0x38] sm:$0xff] }
   0x4   :  { %v39_v7 = vld [vmem:[%s803_s2 + $0x28] sm:$0xff]  ;;  %v41_v11 = vld [vmem:[%s803_s2 + $0x38] sm:$0xff]  ;;  %v38_v12 = vld [vmem:[%s803_s2 + $0x20] sm:$0xff] }
   0x5   :  { %98 = vperm.xlu1 %519, %v39_v7   ;;  %108 = vperm.xlu0 %518, %v41_v11   ;;  %v61_v13 = vld [vmem:[%s802_s0 + $0x30] sm:$0xff]  ;;  %v60_v14 = vld [vmem:[%s802_s0 + $0x28] sm:$0xff]  ;;  %v34_v16 = vld [vmem:[%s803_s2] sm:$0xff] }
   0x6   :  { %469 = vmatpush.xpose.msk.msra.mxu0 %vm111_vm0, %v69_v1  ;;  %v40_v15 = vld [vmem:[%s803_s2 + $0x30] sm:$0xff]  ;;  %v59_v17 = vld [vmem:[%s802_s0 + $0x20] sm:$0xff]  ;;  %v58_v18 = vld [vmem:[%s802_s0 + $0x18] sm:$0xff] }
   0x7   :  { %v35_v19 = vld [vmem:[%s803_s2 + $0x8] sm:$0xff]  ;;  %v57_v20 = vld [vmem:[%s802_s0 + $0x10] sm:$0xff]  ;;  %v55_v22 = vld [vmem:[%s802_s0] sm:$0xff] }
   0x8   :  { %v56_v21 = vld [vmem:[%s802_s0 + $0x8] sm:$0xff]  ;;  %v26_v23 = vld [vmem:[%s804_s1] sm:$0xff]  ;;  %v37_v25 = vld [vmem:[%s803_s2 + $0x18] sm:$0xff] }
   0x9   :  { %v27_v24 = vld [vmem:[%s804_s1 + $0x8] sm:$0xff]  ;;  %88 = vperm.xlu2 %520, %v37_v25   ;;  %v28_v26 = vld [vmem:[%s804_s1 + $0x10] sm:$0xff]  ;;  %v29_v28 = vld [vmem:[%s804_s1 + $0x18] sm:$0xff] }
   0xa   :  { %470 = vmatpush.xpose.msk.msra.mxu0 %vm111_vm0, %v68_v2  ;;  %v36_v27 = vld [vmem:[%s803_s2 + $0x10] sm:$0xff]  ;;  %v47_v29 = vld [vmem:[%s805_s4 + $0x8] sm:$0xff]  ;;  %v46_v31 = vld [vmem:[%s805_s4] sm:$0xff] }
   0xb   :  { %v48_v30 = vld [vmem:[%s805_s4 + $0x10] sm:$0xff]  ;;  %v30_v32 = vld [vmem:[%s804_s1 + $0x20] sm:$0xff]  ;;  %v49_v33 = vld [vmem:[%s805_s4 + $0x18] sm:$0xff] }
   0xc   :  { %v31_v34 = vld [vmem:[%s804_s1 + $0x28] sm:$0xff]  ;;  %v32_v35 = vld [vmem:[%s804_s1 + $0x30] sm:$0xff]  ;;  %v33_v36 = vld [vmem:[%s804_s1 + $0x38] sm:$0xff] }
   0xd   :  { %93 = vperm.xlu1 %519, %v38_v12   ;;  %103 = vperm.xlu0 %518, %v40_v15   ;;  %v44_v7 = vld [vmem:[%s806_s3 + $0x10] sm:$0xff]  ;;  %v53_v9 = vld [vmem:[%s807_s5 + $0x18] sm:$0xff]  ;;  %v51_v11 = vld [vmem:[%s807_s5 + $0x8] sm:$0xff] }
   0xe   :  { %471 = vmatpush.xpose.msk.msra.mxu0 %vm111_vm0, %v67_v3  ;;  %395 = vmatpush.msra.mxu2 %v53_v9  ;;  %v50_v15 = vld [vmem:[%s807_s5] sm:$0xff] }
   0xf   :  { %512 = vmatpush.msra.mxu3 %v53_v9 }
  0x11   :  { %83 = vperm.xlu2 %520, %v36_v27  }
  0x12   :  { %472 = vmatpush.xpose.msk.msra.mxu0 %vm111_vm0, %v66_v4 }
  0x15   :  { %73 = vperm.xlu1 %519, %v34_v16   ;;  %78 = vperm.xlu0 %518, %v35_v19  }
  0x16   :  { %473 = vmatpush.xpose.msk.msra.mxu0 %vm111_vm0, %v65_v5  ;;  %v42_v5 = vld [vmem:[%s806_s3] sm:$0xff] }
  0x19   :  { %235 = vperm.xlu2 %520, %v46_v31  }
  0x1a   :  { %474 = vmatpush.xpose.msk.msra.mxu0 %vm111_vm0, %v64_v6  ;;  %v43_v6 = vld [vmem:[%s806_s3 + $0x8] sm:$0xff] }
  0x1d   :  { %240 = vperm.xlu0 %518, %v47_v29   ;;  %245 = vperm.xlu1 %519, %v48_v30  }
  0x1e   :  { %475 = vmatpush.xpose.msk.msra.mxu0 %vm111_vm0, %v63_v8  ;;  %v45_v8 = vld [vmem:[%s806_s3 + $0x18] sm:$0xff] }
  0x21   :  { %250 = vperm.xlu2 %520, %v49_v33  }
  0x22   :  { %476 = vmatpush.xpose.msk.msra.mxu0 %vm111_vm0, %v62_v10  ;;  %v52_v10 = vld [vmem:[%s807_s5 + $0x10] sm:$0xff] }
  0x23   :  { %396 = vmatpush.msra.mxu2 %v52_v10  ;;  %513 = vmatpush.msra.mxu3 %v52_v10 }
  0x25   :  { %397 = vmatpush.msra.mxu2 %v51_v11  ;;  %514 = vmatpush.msra.mxu3 %v51_v11 }
  0x26   :  { %477 = vmatpush.xpose.msk.msra.mxu0 %vm111_vm0, %v61_v13 }
  0x27   :  { %398 = vmatpush.msra.mxu2 %v50_v15  ;;  %515 = vmatpush.msra.mxu3 %v50_v15 }
  0x2a   :  { %478 = vmatpush.xpose.msk.msra.mxu0 %vm111_vm0, %v60_v14 }
  0x2e   :  { %479 = vmatpush.xpose.msk.msra.mxu0 %vm111_vm0, %v59_v17 }
  0x32   :  { %480 = vmatpush.xpose.msk.msra.mxu0 %vm111_vm0, %v58_v18 }
  0x36   :  { %481 = vmatpush.xpose.msk.msra.mxu0 %vm111_vm0, %v57_v20 }
  0x3a   :  { %482 = vmatpush.xpose.msk.msra.mxu0 %vm111_vm0, %v56_v21 }
  0x3e   :  { %483 = vmatpush.xpose.msk.msra.mxu0 %vm111_vm0, %v55_v22 }
  0x41   :  { %484 = vmatmul.msk.f32.vlgmr.msra.gmra.mxu0 %vm111_vm0, %v26_v23 }
  0x49   :  { %485 = vmatmul.msk.f32.gmra.mxu0 %vm111_vm0, %v27_v24 }
  0x51   :  { %486 = vmatmul.msk.f32.gmra.mxu0 %vm111_vm0, %v28_v26 }
  0x59   :  { %487 = vmatmul.msk.f32.gmra.mxu0 %vm111_vm0, %v29_v28 }
  0x61   :  { %488 = vmatmul.msk.f32.gmra.mxu0 %vm111_vm0, %v30_v32 }
  0x63   :  { %v89_v46 = vpop.permute.xlu2 %88 }
  0x69   :  { %489 = vmatmul.msk.f32.gmra.mxu0 %vm111_vm0, %v31_v34 }
  0x6b   :  { %v84_v56 = vpop.permute.xlu2 %83 }
  0x71   :  { %490 = vmatmul.msk.f32.gmra.mxu0 %vm111_vm0, %v32_v35 }
  0x73   :  { %v236_v12 = vpop.permute.xlu2 %235 }
  0x77   :  { %v109_v43 = vpop.permute.xlu0 %108  ;;  %v99_v44 = vpop.permute.xlu1 %98 }
  0x79   :  { %491 = vmatmul.msk.f32.gmra.mxu0 %vm111_vm0, %v33_v36 }
  0x7b   :  { %v251_v25 = vpop.permute.xlu2 %250 }
  0x7f   :  { %v104_v47 = vpop.permute.xlu0 %103  ;;  %v94_v48 = vpop.permute.xlu1 %93 }
  0x87   :  { %v79_v59 = vpop.permute.xlu0 %78  ;;  %v74_v62 = vpop.permute.xlu1 %73 }
  0x8f   :  { %v241_v17 = vpop.permute.xlu0 %240  ;;  %v246_v21 = vpop.permute.xlu1 %245 }
  0xbe   :  { %v201_v37 = vpop.f32.mrf.mxu0 }
  0xbf   :  { %v202_v1 = vadd.f32 %v201_v37, %v74_v62 }
  0xc1   :  { %v225_v4 = vmax.f32 %v202_v1, 0.0 }
  0xc6   :  { %v204_v38 = vpop.f32.mrf.mxu0 }
  0xc7   :  { %v205_v63 = vadd.f32 %v204_v38, %v79_v59 }
  0xc9   :  { %v226_v3 = vmax.f32 %v205_v63, 0.0 }
  0xce   :  { %v207_v39 = vpop.f32.mrf.mxu0 }
  0xcf   :  { %v208_v60 = vadd.f32 %v207_v39, %v84_v56 }
  0xd1   :  { %v227_v2 = vmax.f32 %v208_v60, 0.0 }
  0xd6   :  { %v210_v40 = vpop.f32.mrf.mxu0 }
  0xd7   :  { %v211_v57 = vadd.f32 %v210_v40, %v89_v46 }
  0xd9   :  { %v228_v0 = vmax.f32 %v211_v57, 0.0 }
  0xde   :  { %v213_v41 = vpop.f32.mrf.mxu0 }
  0xdf   :  { %v214_v54 = vadd.f32 %v213_v41, %v94_v48 }
  0xe1   :  { %v229_v61 = vmax.f32 %v214_v54, 0.0 }
  0xe6   :  { %v216_v42 = vpop.f32.mrf.mxu0 }
  0xe7   :  { %v217_v52 = vadd.f32 %v216_v42, %v99_v44 }
  0xe9   :  { %v230_v58 = vmax.f32 %v217_v52, 0.0 }
  0xee   :  { %v219_v45 = vpop.f32.mrf.mxu0 }
  0xef   :  { %v220_v50 = vadd.f32 %v219_v45, %v104_v47  ;;  %v521_v45 = vld [vmem:[%s808_s6] ss:$0 sm:$0xff] }
  0xf1   :  { %v231_v55 = vmax.f32 %v220_v50, 0.0 }
  0xf6   :  { %v222_v49 = vpop.f32.mrf.mxu0 }
  0xf7   :  { %v223_v51 = vadd.f32 %v222_v49, %v109_v43 }
  0xf9   :  { %v232_v53 = vmax.f32 %v223_v51, 0.0 }
  0xfb   :  { %274 = vmatpush.msra.mxu1 %v232_v53 }
  0xfd   :  { %275 = vmatpush.msra.mxu1 %v231_v55 }
  0xff   :  { %276 = vmatpush.msra.mxu1 %v230_v58 }
 0x101   :  { %277 = vmatpush.msra.mxu1 %v229_v61 }
 0x103   :  { %278 = vmatpush.msra.mxu1 %v228_v0 }
 0x105   :  { %279 = vmatpush.msra.mxu1 %v227_v2 }
 0x107   :  { %280 = vmatpush.msra.mxu1 %v226_v3 }
 0x109   :  { %281 = vmatpush.msra.mxu1 %v225_v4 }
 0x10a   :  { %492 = vmatmul.msk.f32.vlgmr.msra.gmra.mxu1 %vm253_vm1, %v42_v5 }
 0x112   :  { %493 = vmatmul.msk.f32.gmra.mxu1 %vm253_vm1, %v43_v6 }
 0x11a   :  { %494 = vmatmul.msk.f32.gmra.mxu1 %vm253_vm1, %v44_v7 }
 0x122   :  { %495 = vmatmul.msk.f32.gmra.mxu1 %vm253_vm1, %v45_v8 }
 0x187   :  { %v283_v13 = vpop.f32.mrf.mxu1 }
 0x188   :  { %v284_v14 = vadd.f32 %v283_v13, %v236_v12 }
 0x18a   :  { %v295_v16 = vmax.f32 %v284_v14, 0.0 }
 0x18c   :  { %302 = vxpose.xlu0.b32.start [1/4] (short) %v295_v16, 128 }
 0x18f   :  { %v286_v18 = vpop.f32.mrf.mxu1 }
 0x190   :  { %v287_v19 = vadd.f32 %v286_v18, %v241_v17 }
 0x192   :  { %v296_v20 = vmax.f32 %v287_v19, 0.0 }
 0x194   :  { %303 = vxpose.xlu0.b32.cont [2/4] (short) %v296_v20, 128 }
 0x197   :  { %v289_v22 = vpop.f32.mrf.mxu1 }
 0x198   :  { %v290_v23 = vadd.f32 %v289_v22, %v246_v21 }
 0x19a   :  { %v297_v24 = vmax.f32 %v290_v23, 0.0 }
 0x19c   :  { %304 = vxpose.xlu0.b32.cont [3/4] (short) %v297_v24, 128 }
 0x19f   :  { %v292_v26 = vpop.f32.mrf.mxu1 }
 0x1a0   :  { %v293_v27 = vadd.f32 %v292_v26, %v251_v25 }
 0x1a2   :  { %v298_v28 = vmax.f32 %v293_v27, 0.0 }
 0x1a4   :  { %305 = vxpose.xlu0.b32.end [4/4] (short) %v298_v28, 128 }
 0x230   :  { %v318_v29 = vpop.trf.xlu0 }
 0x231   :  { %496 = vmatmul.msk.f32.vlgmr.msra.gmra.mxu2 %vm334_vm2, %v318_v29 }
 0x238   :  { %v319_v30 = vpop.trf.xlu0 }
 0x239   :  { %497 = vmatmul.msk.f32.gmra.mxu2 %vm334_vm2, %v319_v30 }
 0x240   :  { %v320_v31 = vpop.trf.xlu0 }
 0x241   :  { %498 = vmatmul.msk.f32.gmra.mxu2 %vm334_vm2, %v320_v31 }
 0x248   :  { %v321_v32 = vpop.trf.xlu0 }
 0x249   :  { %499 = vmatmul.msk.f32.gmra.mxu2 %vm334_vm2, %v321_v32 }
 0x250   :  { %v322_v33 = vpop.trf.xlu0 }
 0x251   :  { %500 = vmatmul.msk.f32.gmra.mxu2 %vm334_vm2, %v322_v33 }
 0x258   :  { %v323_v34 = vpop.trf.xlu0 }
 0x259   :  { %501 = vmatmul.msk.f32.gmra.mxu2 %vm334_vm2, %v323_v34 }
 0x260   :  { %v324_v35 = vpop.trf.xlu0 }
 0x261   :  { %502 = vmatmul.msk.f32.gmra.mxu2 %vm334_vm2, %v324_v35 }
 0x268   :  { %v325_v36 = vpop.trf.xlu0 }
 0x269   :  { %503 = vmatmul.msk.f32.gmra.mxu2 %vm334_vm2, %v325_v36 }
 0x270   :  { %v326_v37 = vpop.trf.xlu0 }
 0x271   :  { %504 = vmatmul.msk.f32.gmra.mxu2 %vm334_vm2, %v326_v37 }
 0x278   :  { %v327_v38 = vpop.trf.xlu0 }
 0x279   :  { %505 = vmatmul.msk.f32.vlgmr.msra.gmra.mxu3 %vm334_vm2, %v327_v38 }
 0x280   :  { %v328_v39 = vpop.trf.xlu0 }
 0x281   :  { %506 = vmatmul.msk.f32.gmra.mxu3 %vm334_vm2, %v328_v39 }
 0x288   :  { %v329_v40 = vpop.trf.xlu0 }
 0x289   :  { %507 = vmatmul.msk.f32.gmra.mxu3 %vm334_vm2, %v329_v40 }
 0x290   :  { %v330_v41 = vpop.trf.xlu0 }
 0x291   :  { %508 = vmatmul.msk.f32.gmra.mxu3 %vm334_vm2, %v330_v41 }
 0x298   :  { %v331_v42 = vpop.trf.xlu0 }
 0x299   :  { %509 = vmatmul.msk.f32.gmra.mxu3 %vm334_vm2, %v331_v42 }
 0x2a0   :  { %v332_v43 = vpop.trf.xlu0 }
 0x2a1   :  { %510 = vmatmul.msk.f32.gmra.mxu3 %vm334_vm2, %v332_v43 }
 0x2a8   :  { %v333_v44 = vpop.trf.xlu0 }
 0x2a9   :  { %511 = vmatmul.msk.f32.gmra.mxu3 %vm334_vm2, %v333_v44 }
 0x2b4   :  { %v400_v46 = vpop.f32.mrf.mxu2 }
 0x2b5   :  { %v401_v47 = vadd.f32 %v521_v45, %v400_v46 }
 0x2b7   :  { %448 = vst.msk [vmem:[%s809_s7] sm:$0xff] %vm111_vm0, %v401_v47 }
 0x2bc   :  { %v403_v48 = vpop.f32.mrf.mxu2 }
 0x2bd   :  { %v404_v49 = vadd.f32 %v521_v45, %v403_v48 }
 0x2bf   :  { %449 = vst.msk [vmem:[%s809_s7 + $0x8] sm:$0xff] %vm111_vm0, %v404_v49 }
 0x2c4   :  { %v406_v50 = vpop.f32.mrf.mxu2 }
 0x2c5   :  { %v407_v51 = vadd.f32 %v521_v45, %v406_v50 }
 0x2c7   :  { %450 = vst.msk [vmem:[%s809_s7 + $0x10] sm:$0xff] %vm111_vm0, %v407_v51 }
 0x2cc   :  { %v409_v52 = vpop.f32.mrf.mxu2 }
 0x2cd   :  { %v410_v53 = vadd.f32 %v521_v45, %v409_v52 }
 0x2cf   :  { %451 = vst.msk [vmem:[%s809_s7 + $0x18] sm:$0xff] %vm111_vm0, %v410_v53 }
 0x2d4   :  { %v412_v54 = vpop.f32.mrf.mxu2 }
 0x2d5   :  { %v413_v55 = vadd.f32 %v521_v45, %v412_v54 }
 0x2d7   :  { %452 = vst.msk [vmem:[%s809_s7 + $0x20] sm:$0xff] %vm111_vm0, %v413_v55 }
 0x2dc   :  { %v415_v56 = vpop.f32.mrf.mxu2 }
 0x2dd   :  { %v416_v57 = vadd.f32 %v521_v45, %v415_v56 }
 0x2df   :  { %453 = vst.msk [vmem:[%s809_s7 + $0x28] sm:$0xff] %vm111_vm0, %v416_v57 }
 0x2e4   :  { %v418_v58 = vpop.f32.mrf.mxu2 }
 0x2e5   :  { %v419_v59 = vadd.f32 %v521_v45, %v418_v58 }
 0x2e7   :  { %454 = vst.msk [vmem:[%s809_s7 + $0x30] sm:$0xff] %vm111_vm0, %v419_v59 }
 0x2ec   :  { %v421_v60 = vpop.f32.mrf.mxu2 }
 0x2ed   :  { %v422_v61 = vadd.f32 %v521_v45, %v421_v60 }
 0x2ef   :  { %455 = vst.msk [vmem:[%s809_s7 + $0x38] sm:$0xff] %vm111_vm0, %v422_v61 }
 0x2f4   :  { %v424_v62 = vpop.f32.mrf.mxu2 }
 0x2f5   :  { %v425_v63 = vadd.f32 %v521_v45, %v424_v62 }
 0x2f7   :  { %456 = vst.msk [vmem:[%s809_s7 + $0x40] sm:$0xff] %vm111_vm0, %v425_v63 }
 0x2fc   :  { %v427_v0 = vpop.f32.mrf.mxu3 }
 0x2fd   :  { %v428_v1 = vadd.f32 %v521_v45, %v427_v0 }
 0x2ff   :  { %457 = vst.msk [vmem:[%s809_s7 + $0x48] sm:$0xff] %vm111_vm0, %v428_v1 }
 0x304   :  { %v430_v2 = vpop.f32.mrf.mxu3 }
 0x305   :  { %v431_v3 = vadd.f32 %v521_v45, %v430_v2 }
 0x307   :  { %458 = vst.msk [vmem:[%s809_s7 + $0x50] sm:$0xff] %vm111_vm0, %v431_v3 }
 0x30c   :  { %v433_v4 = vpop.f32.mrf.mxu3 }
 0x30d   :  { %v434_v5 = vadd.f32 %v521_v45, %v433_v4 }
 0x30f   :  { %459 = vst.msk [vmem:[%s809_s7 + $0x58] sm:$0xff] %vm111_vm0, %v434_v5 }
 0x314   :  { %v436_v6 = vpop.f32.mrf.mxu3 }
 0x315   :  { %v437_v7 = vadd.f32 %v521_v45, %v436_v6 }
 0x317   :  { %460 = vst.msk [vmem:[%s809_s7 + $0x60] sm:$0xff] %vm111_vm0, %v437_v7 }
 0x31c   :  { %v439_v8 = vpop.f32.mrf.mxu3 }
 0x31d   :  { %v440_v9 = vadd.f32 %v521_v45, %v439_v8 }
 0x31f   :  { %461 = vst.msk [vmem:[%s809_s7 + $0x68] sm:$0xff] %vm111_vm0, %v440_v9 }
 0x324   :  { %v442_v10 = vpop.f32.mrf.mxu3 }
 0x325   :  { %v443_v11 = vadd.f32 %v521_v45, %v442_v10 }
 0x327   :  { %462 = vst.msk [vmem:[%s809_s7 + $0x70] sm:$0xff] %vm111_vm0, %v443_v11 }
 0x32c   :  { %v445_v12 = vpop.f32.mrf.mxu3 }
 0x32d   :  { %v446_v13 = vadd.f32 %v521_v45, %v445_v12 }
 0x32f   :  { %463 = vst.msk [vmem:[%s809_s7 + $0x78] sm:$0xff] %vm111_vm0, %v446_v13 }

</bundles_post_ra>
